<compile_context>
chip_gen: v7x
topology: tpu7x:2x2x1
jax: 0.10.0
libtpu: 0.0.40
codegen_flags: <defaults>
</compile_context>

<pallas_src>
from functools import lru_cache, partial

import numpy as np
import jax
import jax.numpy as jnp
from jax.experimental import pallas as pl
from jax.experimental.pallas import tpu as pltpu


# ---------------------------------------------------------------------------
# Fixed separable operators (host numpy, cached -> baked in as jit constants)
# ---------------------------------------------------------------------------
def _upsample_matrix(n):
    """(2n, n): bilinear x2 upsample, align_corners=False (PyTorch semantics)."""
    u = np.zeros((2 * n, n), dtype=np.float32)
    for i in range(2 * n):
        src = max((i + 0.5) / 2.0 - 0.5, 0.0)
        f = int(np.floor(src))
        frac = src - f
        f1 = min(f + 1, n - 1)
        u[i, f] += 1.0 - frac
        u[i, f1] += frac
    return u


def _blur_matrix(n):
    """(n, n): 1D [1,2,1]/4 blur with reflect padding (kornia filter2D, normalized)."""
    b = np.zeros((n, n), dtype=np.float32)
    for i in range(n):
        for dj, kv in ((-1, 0.25), (0, 0.5), (1, 0.25)):
            j = i + dj
            if j < 0:
                j = -j
            if j >= n:
                j = 2 * n - 2 - j
            b[i, j] += kv
    return b


@lru_cache(maxsize=None)
def _axis_operators(h, w):
    """A_h (2H, H) and A_w^T (W, 2W): bilinear-x2 followed by [1,2,1]/4 blur, per axis."""
    ah = _blur_matrix(2 * h) @ _upsample_matrix(h)          # (2H, H)
    awt = (_blur_matrix(2 * w) @ _upsample_matrix(w)).T     # (W, 2W)
    return ah.astype(np.float32), np.ascontiguousarray(awt, dtype=np.float32)


def _vmem_limit_bytes(per_step_bytes):
    # Double-buffered pipeline blocks + margin; floor 16 MiB (<= every generation's
    # default scoped limit), cap 64 MiB (v7x physical VMEM).
    need = 2 * int(per_step_bytes) + (2 << 20)
    return int(min(max(need, 16 << 20), 64 << 20))


# ---------------------------------------------------------------------------
# Kernels
# ---------------------------------------------------------------------------
def _make_upsample_kernel(out_ch, in_ch, has_prev, dot_dtype):
    """Fused: modulated 1x1 conv (+prev) -> bilinear x2 -> [1,2,1]x[1,2,1]/16 blur.

    Per grid step (one image):
      wmod_s  : SMEM (B*O*C,) f32   modulated conv weights (scalar prefetch)
      x_ref   : VMEM (1, C, H, W)
      prev_ref: VMEM (1, O, H, W)   (only when has_prev)
      awt_ref : VMEM (W, 2W)        constant, resident across the grid
      ah_ref  : VMEM (2H, H)        constant, resident across the grid
      out_ref : VMEM (1, O, 2H, 2W)
    """

    def kernel(wmod_s, x_ref, *rest):
        if has_prev:
            prev_ref, awt_ref, ah_ref, out_ref = rest
        else:
            awt_ref, ah_ref, out_ref = rest
        b = pl.program_id(0)
        awt = awt_ref[...]     # (W, 2W), already in dot_dtype
        ah = ah_ref[...]       # (2H, H), already in dot_dtype
        for o in range(out_ch):
            base = (b * out_ch + o) * in_ch
            # Modulated 1x1 conv as C broadcast-FMAs on the VPU (O, C small); this
            # keeps (H, W) as the trailing dims so the separable passes need no
            # in-kernel reshape/transpose.  Kept in f32 (v5e-safe elementwise).
            acc = wmod_s[base] * x_ref[0, 0]
            for c in range(1, in_ch):
                acc = acc + wmod_s[base + c] * x_ref[0, c]
            if has_prev:
                acc = acc + prev_ref[0, o]
            # Separable upsample+blur: (H,W)@(W,2W) -> (H,2W); (2H,H)@(H,2W) -> (2H,2W).
            y = jnp.dot(acc.astype(dot_dtype), awt,
                        preferred_element_type=jnp.float32)
            out_ref[0, o] = jnp.dot(ah, y.astype(dot_dtype),
                                    preferred_element_type=jnp.float32)

    return kernel


def _make_conv_kernel(has_prev):
    """upsample=False path: modulated 1x1 conv (+prev), lane-dense flat-HW layout."""

    def kernel(wmod_ref, x_ref, *rest):
        if has_prev:
            prev_ref, out_ref = rest
        else:
            (out_ref,) = rest
        res = jnp.dot(wmod_ref[0], x_ref[0], preferred_element_type=jnp.float32)
        if has_prev:
            res = res + prev_ref[0]
        out_ref[0] = res

    return kernel


# ---------------------------------------------------------------------------
# Wrapper (jitted; style modulation hoisted into XLA)
# ---------------------------------------------------------------------------
@partial(jax.jit, static_argnames=("upsample", "use_bf16"))
def rgb_block_forward(x, prev_rgb, istyle, params, upsample=True, use_bf16=False):
    ws = params["to_style_w"]      # (C, L)  nn.Linear(latent_dim, input_channel)
    bs = params["to_style_b"]      # (C,)
    wconv = params["conv_w"]       # (O, C, 1, 1)  Conv2DMod(kernel=1, demod=False)

    b, c, h, w = x.shape
    o = wconv.shape[0]
    hw = h * w
    f32 = jnp.float32
    dot_dtype = jnp.bfloat16 if use_bf16 else f32
    has_prev = prev_rgb is not None

    # Style modulation (tiny; pure XLA) -> per-sample modulated 1x1 conv weights.
    style = istyle @ ws.T + bs                                          # (B, C)
    wmod = (wconv.reshape(o, c)[None] * (style[:, None, :] + 1.0)).astype(f32)  # (B, O, C)

    # ----------------------------- upsample=False -----------------------------
    if not upsample:
        x_flat = x.reshape(b, c, hw).astype(dot_dtype)
        wmod_in = wmod.astype(dot_dtype)
        operands = [wmod_in, x_flat]
        in_specs = [pl.BlockSpec((1, o, c), lambda i: (i, 0, 0)),
                    pl.BlockSpec((1, c, hw), lambda i: (i, 0, 0))]
        if has_prev:
            operands.append(prev_rgb.reshape(b, o, hw).astype(f32))
            in_specs.append(pl.BlockSpec((1, o, hw), lambda i: (i, 0, 0)))

        step_bytes = (o * c + c * hw) * x_flat.dtype.itemsize \
            + (o * hw) * 4 * (2 if has_prev else 1)
        bytes_accessed = sum(op.size * op.dtype.itemsize for op in operands) + b * o * hw * 4
        cost = pl.CostEstimate(flops=2 * b * o * c * hw, transcendentals=0,
                               bytes_accessed=int(bytes_accessed))

        out = pl.pallas_call(
            _make_conv_kernel(has_prev),
            out_shape=jax.ShapeDtypeStruct((b, o, hw), f32),
            grid_spec=pltpu.PrefetchScalarGridSpec(
                num_scalar_prefetch=0,
                grid=(b,),
                in_specs=in_specs,
                out_specs=pl.BlockSpec((1, o, hw), lambda i: (i, 0, 0)),
            ),
            compiler_params=pltpu.CompilerParams(
                dimension_semantics=("parallel",),
                vmem_limit_bytes=_vmem_limit_bytes(step_bytes)),
            cost_estimate=cost,
        )(*operands)
        return out.reshape(b, o, h, w)

    # ----------------------------- upsample=True ------------------------------
    ah_np, awt_np = _axis_operators(h, w)
    ah_arr = jnp.asarray(ah_np, dtype=dot_dtype)       # (2H, H)
    awt_arr = jnp.asarray(awt_np, dtype=dot_dtype)     # (W, 2W)
    wmod_flat = wmod.reshape(b * o * c)                # -> SMEM via scalar prefetch

    operands = [wmod_flat, x.astype(f32)]
    in_specs = [pl.BlockSpec((1, c, h, w), lambda i, *_: (i, 0, 0, 0))]
    if has_prev:
        operands.append(prev_rgb.astype(f32))
        in_specs.append(pl.BlockSpec((1, o, h, w), lambda i, *_: (i, 0, 0, 0)))
    operands += [awt_arr, ah_arr]
    # Constant index_map -> the KB-sized per-axis operators are fetched once and
    # stay VMEM-resident across the whole batch grid (dense K no longer exists).
    in_specs += [pl.BlockSpec((w, 2 * w), lambda i, *_: (0, 0)),
                 pl.BlockSpec((2 * h, h), lambda i, *_: (0, 0))]

    flops = 2 * b * o * c * hw                      # 1x1 conv (VPU FMAs)
    flops += 2 * b * o * h * w * (2 * w)            # width pass
    flops += 2 * b * o * (2 * h) * h * (2 * w)      # height pass
    bytes_accessed = sum(op.size * op.dtype.itemsize for op in operands) \
        + b * o * 4 * hw * 4
    cost = pl.CostEstimate(flops=int(flops), transcendentals=0,
                           bytes_accessed=int(bytes_accessed))

    step_bytes = (c * hw + (o * hw if has_prev else 0) + o * 4 * hw) * 4 \
        + (w * 2 * w + 2 * h * h) * awt_arr.dtype.itemsize

    out = pl.pallas_call(
        _make_upsample_kernel(o, c, has_prev, dot_dtype),
        out_shape=jax.ShapeDtypeStruct((b, o, 2 * h, 2 * w), f32),
        grid_spec=pltpu.PrefetchScalarGridSpec(
            num_scalar_prefetch=1,
            grid=(b,),
            in_specs=in_specs,
            out_specs=pl.BlockSpec((1, o, 2 * h, 2 * w), lambda i, *_: (i, 0, 0, 0)),
        ),
        compiler_params=pltpu.CompilerParams(
            dimension_semantics=("parallel",),   # one image per core on v7x megacore
            vmem_limit_bytes=_vmem_limit_bytes(step_bytes)),
        cost_estimate=cost,
    )(*operands)
    return out   # already NCHW at 2x resolution


# ---------------------------------------------------------------------------
# Plain-JAX references (same math, no Pallas)
# ---------------------------------------------------------------------------
def _reference_conv(x, prev_rgb, istyle, params):
    ws, bs, wconv = params["to_style_w"], params["to_style_b"], params["conv_w"]
    o, c = wconv.shape[0], wconv.shape[1]
    style = istyle @ ws.T + bs
    wmod = wconv.reshape(o, c)[None] * (style[:, None, :] + 1.0)
    out = jnp.einsum("boc,bchw->bohw", wmod, x)
    if prev_rgb is not None:
        out = out + prev_rgb
    return out


def _reference_upsample_blur(y, ah, awt):
    # y: (B, O, H, W), ah: (2H, H), awt: (W, 2W)
    return jnp.einsum("Hh,bohw,wW->boHW", ah, y, awt)


if __name__ == "__main__":
    b, latent_dim, input_channel, h, w = 2, 32, 8, 16, 16
    out_filters = 3   # rgba=False
    key = jax.random.PRNGKey(0)
    k1, k2, k3, k4, k5, k6 = jax.random.split(key, 6)

    # deterministic synthetic parameters (shapes from RGBBlock.__init__)
    params = {
        "to_style_w": jax.random.normal(k1, (input_channel, latent_dim), jnp.float32)
        * (1.0 / np.sqrt(latent_dim)),
        "to_style_b": jax.random.normal(k2, (input_channel,), jnp.float32) * 0.1,
        "conv_w": jax.random.normal(k3, (out_filters, input_channel, 1, 1), jnp.float32)
        * np.sqrt(2.0 / input_channel),
    }

    x = jax.random.normal(k4, (b, input_channel, h, w), jnp.float32)
    prev_rgb = jax.random.normal(k5, (b, out_filters, h, w), jnp.float32)
    istyle = jax.random.normal(k6, (b, latent_dim), jnp.float32)

    ah_np, awt_np = _axis_operators(h, w)
    ah_j, awt_j = jnp.asarray(ah_np), jnp.asarray(awt_np)

    # 1) upsample=True, with residual (fused conv + residual + separable up/blur)
    out = jax.block_until_ready(rgb_block_forward(x, prev_rgb, istyle, params, upsample=True))
    assert out.shape == (b, out_filters, 2 * h, 2 * w), out.shape
    ref = _reference_upsample_blur(_reference_conv(x, prev_rgb, istyle, params), ah_j, awt_j)
    np.testing.assert_allclose(np.asarray(out), np.asarray(ref), rtol=2e-4, atol=2e-4)

    # 2) upsample=True, prev_rgb=None (first block: no residual input / DMA at all)
    out_np = jax.block_until_ready(rgb_block_forward(x, None, istyle, params, upsample=True))
    ref_np = _reference_upsample_blur(_reference_conv(x, None, istyle, params), ah_j, awt_j)
    np.testing.assert_allclose(np.asarray(out_np), np.asarray(ref_np), rtol=2e-4, atol=2e-4)

    # 3) upsample=False, with residual (conv + residual, flat lane-dense layout)
    out2 = jax.block_until_ready(rgb_block_forward(x, prev_rgb, istyle, params, upsample=False))
    assert out2.shape == (b, out_filters, h, w), out2.shape
    ref2 = _reference_conv(x, prev_rgb, istyle, params)
    np.testing.assert_allclose(np.asarray(out2), np.asarray(ref2), rtol=2e-4, atol=2e-4)

    # 4) bf16 MXU operands (v6e/v7x fast path), f32 accumulate -> loose tolerance
    out3 = jax.block_until_ready(
        rgb_block_forward(x, prev_rgb, istyle, params, upsample=True, use_bf16=True))
    np.testing.assert_allclose(np.asarray(out3), np.asarray(ref), rtol=5e-2, atol=2e-1)

    print("KERNEL_OK")
</pallas_src>

<mosaic_0001>
module attributes {stable_mosaic.version = 11 : i64} {
  func.func @kernel(%arg0: i32, %arg1: memref<48xf32, #tpu.memory_space<smem>>, %arg2: memref<1x8x16x16xf32, #tpu.memory_space<vmem>>, %arg3: memref<1x3x16x16xf32, #tpu.memory_space<vmem>>, %arg4: memref<16x32xf32, #tpu.memory_space<vmem>>, %arg5: memref<32x16xf32, #tpu.memory_space<vmem>>, %arg6: memref<1x3x32x32xf32, #tpu.memory_space<vmem>>) attributes {dimension_semantics = [#tpu.dimension_semantics<parallel>], iteration_bounds = array<i64: 2>, scalar_prefetch = 1 : i64, scratch_operands = 0 : i64, tpu.core_type = #tpu.core_type<tc>, window_params = [{transform_indices = @transform_0, window_bounds = array<i64: 1, 8, 16, 16>}, {transform_indices = @transform_1, window_bounds = array<i64: 1, 3, 16, 16>}, {pipeline_mode = #tpu.pipeline_mode<synchronous>, transform_indices = @transform_2, window_bounds = array<i64: 16, 32>}, {pipeline_mode = #tpu.pipeline_mode<synchronous>, transform_indices = @transform_3, window_bounds = array<i64: 32, 16>}, {transform_indices = @transform_4, window_bounds = array<i64: 1, 3, 32, 32>}]} {
    %c0 = arith.constant 0 : index
    %c0_0 = arith.constant 0 : index
    %0 = vector.load %arg4[%c0, %c0_0] : memref<16x32xf32, #tpu.memory_space<vmem>>, vector<16x32xf32>
    %c0_1 = arith.constant 0 : index
    %c0_2 = arith.constant 0 : index
    %1 = vector.load %arg5[%c0_1, %c0_2] : memref<32x16xf32, #tpu.memory_space<vmem>>, vector<32x16xf32>
    %c3_i32 = arith.constant 3 : i32
    %2 = arith.muli %arg0, %c3_i32 : i32
    %c0_i32 = arith.constant 0 : i32
    %3 = arith.addi %2, %c0_i32 : i32
    %c8_i32 = arith.constant 8 : i32
    %4 = arith.muli %3, %c8_i32 : i32
    %5 = arith.index_cast %4 : i32 to index
    %6 = memref.load %arg1[%5] : memref<48xf32, #tpu.memory_space<smem>>
    %c0_3 = arith.constant 0 : index
    %c0_4 = arith.constant 0 : index
    %c0_5 = arith.constant 0 : index
    %c0_6 = arith.constant 0 : index
    %7 = vector.load %arg2[%c0_3, %c0_4, %c0_5, %c0_6] : memref<1x8x16x16xf32, #tpu.memory_space<vmem>>, vector<1x1x16x16xf32>
    %8 = vector.shape_cast %7 : vector<1x1x16x16xf32> to vector<16x16xf32>
    %9 = vector.broadcast %6 : f32 to vector<16x16xf32>
    %10 = arith.mulf %9, %8 : vector<16x16xf32>
    %c1_i32 = arith.constant 1 : i32
    %11 = arith.addi %4, %c1_i32 : i32
    %12 = arith.index_cast %11 : i32 to index
    %13 = memref.load %arg1[%12] : memref<48xf32, #tpu.memory_space<smem>>
    %c0_7 = arith.constant 0 : index
    %c1 = arith.constant 1 : index
    %c0_8 = arith.constant 0 : index
    %c0_9 = arith.constant 0 : index
    %14 = vector.load %arg2[%c0_7, %c1, %c0_8, %c0_9] : memref<1x8x16x16xf32, #tpu.memory_space<vmem>>, vector<1x1x16x16xf32>
    %15 = vector.shape_cast %14 : vector<1x1x16x16xf32> to vector<16x16xf32>
    %16 = vector.broadcast %13 : f32 to vector<16x16xf32>
    %17 = arith.mulf %16, %15 : vector<16x16xf32>
    %18 = arith.addf %10, %17 : vector<16x16xf32>
    %c2_i32 = arith.constant 2 : i32
    %19 = arith.addi %4, %c2_i32 : i32
    %20 = arith.index_cast %19 : i32 to index
    %21 = memref.load %arg1[%20] : memref<48xf32, #tpu.memory_space<smem>>
    %c0_10 = arith.constant 0 : index
    %c2 = arith.constant 2 : index
    %c0_11 = arith.constant 0 : index
    %c0_12 = arith.constant 0 : index
    %22 = vector.load %arg2[%c0_10, %c2, %c0_11, %c0_12] : memref<1x8x16x16xf32, #tpu.memory_space<vmem>>, vector<1x1x16x16xf32>
    %23 = vector.shape_cast %22 : vector<1x1x16x16xf32> to vector<16x16xf32>
    %24 = vector.broadcast %21 : f32 to vector<16x16xf32>
    %25 = arith.mulf %24, %23 : vector<16x16xf32>
    %26 = arith.addf %18, %25 : vector<16x16xf32>
    %c3_i32_13 = arith.constant 3 : i32
    %27 = arith.addi %4, %c3_i32_13 : i32
    %28 = arith.index_cast %27 : i32 to index
    %29 = memref.load %arg1[%28] : memref<48xf32, #tpu.memory_space<smem>>
    %c0_14 = arith.constant 0 : index
    %c3 = arith.constant 3 : index
    %c0_15 = arith.constant 0 : index
    %c0_16 = arith.constant 0 : index
    %30 = vector.load %arg2[%c0_14, %c3, %c0_15, %c0_16] : memref<1x8x16x16xf32, #tpu.memory_space<vmem>>, vector<1x1x16x16xf32>
    %31 = vector.shape_cast %30 : vector<1x1x16x16xf32> to vector<16x16xf32>
    %32 = vector.broadcast %29 : f32 to vector<16x16xf32>
    %33 = arith.mulf %32, %31 : vector<16x16xf32>
    %34 = arith.addf %26, %33 : vector<16x16xf32>
    %c4_i32 = arith.constant 4 : i32
    %35 = arith.addi %4, %c4_i32 : i32
    %36 = arith.index_cast %35 : i32 to index
    %37 = memref.load %arg1[%36] : memref<48xf32, #tpu.memory_space<smem>>
    %c0_17 = arith.constant 0 : index
    %c4 = arith.constant 4 : index
    %c0_18 = arith.constant 0 : index
    %c0_19 = arith.constant 0 : index
    %38 = vector.load %arg2[%c0_17, %c4, %c0_18, %c0_19] : memref<1x8x16x16xf32, #tpu.memory_space<vmem>>, vector<1x1x16x16xf32>
    %39 = vector.shape_cast %38 : vector<1x1x16x16xf32> to vector<16x16xf32>
    %40 = vector.broadcast %37 : f32 to vector<16x16xf32>
    %41 = arith.mulf %40, %39 : vector<16x16xf32>
    %42 = arith.addf %34, %41 : vector<16x16xf32>
    %c5_i32 = arith.constant 5 : i32
    %43 = arith.addi %4, %c5_i32 : i32
    %44 = arith.index_cast %43 : i32 to index
    %45 = memref.load %arg1[%44] : memref<48xf32, #tpu.memory_space<smem>>
    %c0_20 = arith.constant 0 : index
    %c5 = arith.constant 5 : index
    %c0_21 = arith.constant 0 : index
    %c0_22 = arith.constant 0 : index
    %46 = vector.load %arg2[%c0_20, %c5, %c0_21, %c0_22] : memref<1x8x16x16xf32, #tpu.memory_space<vmem>>, vector<1x1x16x16xf32>
    %47 = vector.shape_cast %46 : vector<1x1x16x16xf32> to vector<16x16xf32>
    %48 = vector.broadcast %45 : f32 to vector<16x16xf32>
    %49 = arith.mulf %48, %47 : vector<16x16xf32>
    %50 = arith.addf %42, %49 : vector<16x16xf32>
    %c6_i32 = arith.constant 6 : i32
    %51 = arith.addi %4, %c6_i32 : i32
    %52 = arith.index_cast %51 : i32 to index
    %53 = memref.load %arg1[%52] : memref<48xf32, #tpu.memory_space<smem>>
    %c0_23 = arith.constant 0 : index
    %c6 = arith.constant 6 : index
    %c0_24 = arith.constant 0 : index
    %c0_25 = arith.constant 0 : index
    %54 = vector.load %arg2[%c0_23, %c6, %c0_24, %c0_25] : memref<1x8x16x16xf32, #tpu.memory_space<vmem>>, vector<1x1x16x16xf32>
    %55 = vector.shape_cast %54 : vector<1x1x16x16xf32> to vector<16x16xf32>
    %56 = vector.broadcast %53 : f32 to vector<16x16xf32>
    %57 = arith.mulf %56, %55 : vector<16x16xf32>
    %58 = arith.addf %50, %57 : vector<16x16xf32>
    %c7_i32 = arith.constant 7 : i32
    %59 = arith.addi %4, %c7_i32 : i32
    %60 = arith.index_cast %59 : i32 to index
    %61 = memref.load %arg1[%60] : memref<48xf32, #tpu.memory_space<smem>>
    %c0_26 = arith.constant 0 : index
    %c7 = arith.constant 7 : index
    %c0_27 = arith.constant 0 : index
    %c0_28 = arith.constant 0 : index
    %62 = vector.load %arg2[%c0_26, %c7, %c0_27, %c0_28] : memref<1x8x16x16xf32, #tpu.memory_space<vmem>>, vector<1x1x16x16xf32>
    %63 = vector.shape_cast %62 : vector<1x1x16x16xf32> to vector<16x16xf32>
    %64 = vector.broadcast %61 : f32 to vector<16x16xf32>
    %65 = arith.mulf %64, %63 : vector<16x16xf32>
    %66 = arith.addf %58, %65 : vector<16x16xf32>
    %c0_29 = arith.constant 0 : index
    %c0_30 = arith.constant 0 : index
    %c0_31 = arith.constant 0 : index
    %c0_32 = arith.constant 0 : index
    %67 = vector.load %arg3[%c0_29, %c0_30, %c0_31, %c0_32] : memref<1x3x16x16xf32, #tpu.memory_space<vmem>>, vector<1x1x16x16xf32>
    %68 = vector.shape_cast %67 : vector<1x1x16x16xf32> to vector<16x16xf32>
    %69 = arith.addf %66, %68 : vector<16x16xf32>
    %cst = arith.constant dense<0.000000e+00> : vector<16x32xf32>
    %70 = tpu.matmul %69, %0, %cst {dimension_numbers = #tpu.dot_dimension_numbers<[1], [0], [0], [1], [0, 0, 1, 1], [], []>} : vector<16x16xf32>, vector<16x32xf32>, vector<16x32xf32> -> vector<16x32xf32>
    %cst_33 = arith.constant dense<0.000000e+00> : vector<32x32xf32>
    %71 = tpu.matmul %1, %70, %cst_33 {dimension_numbers = #tpu.dot_dimension_numbers<[1], [0], [0], [1], [0, 0, 1, 1], [], []>} : vector<32x16xf32>, vector<16x32xf32>, vector<32x32xf32> -> vector<32x32xf32>
    %c0_34 = arith.constant 0 : index
    %c0_35 = arith.constant 0 : index
    %c0_36 = arith.constant 0 : index
    %c0_37 = arith.constant 0 : index
    %72 = vector.load %arg6[%c0_34, %c0_35, %c0_36, %c0_37] : memref<1x3x32x32xf32, #tpu.memory_space<vmem>>, vector<1x1x32x32xf32>
    %73 = vector.shape_cast %72 : vector<1x1x32x32xf32> to vector<32x32xf32>
    %74 = vector.shape_cast %71 : vector<32x32xf32> to vector<1x1x32x32xf32>
    tpu.vector_store %arg6[%c0_34, %c0_35, %c0_36, %c0_37], %74 {strides = array<i32>} : memref<1x3x32x32xf32, #tpu.memory_space<vmem>>, vector<1x1x32x32xf32>,
    %c3_i32_38 = arith.constant 3 : i32
    %75 = arith.muli %arg0, %c3_i32_38 : i32
    %c1_i32_39 = arith.constant 1 : i32
    %76 = arith.addi %75, %c1_i32_39 : i32
    %c8_i32_40 = arith.constant 8 : i32
    %77 = arith.muli %76, %c8_i32_40 : i32
    %78 = arith.index_cast %77 : i32 to index
    %79 = memref.load %arg1[%78] : memref<48xf32, #tpu.memory_space<smem>>
    %c0_41 = arith.constant 0 : index
    %c0_42 = arith.constant 0 : index
    %c0_43 = arith.constant 0 : index
    %c0_44 = arith.constant 0 : index
    %80 = vector.load %arg2[%c0_41, %c0_42, %c0_43, %c0_44] : memref<1x8x16x16xf32, #tpu.memory_space<vmem>>, vector<1x1x16x16xf32>
    %81 = vector.shape_cast %80 : vector<1x1x16x16xf32> to vector<16x16xf32>
    %82 = vector.broadcast %79 : f32 to vector<16x16xf32>
    %83 = arith.mulf %82, %81 : vector<16x16xf32>
    %c1_i32_45 = arith.constant 1 : i32
    %84 = arith.addi %77, %c1_i32_45 : i32
    %85 = arith.index_cast %84 : i32 to index
    %86 = memref.load %arg1[%85] : memref<48xf32, #tpu.memory_space<smem>>
    %c0_46 = arith.constant 0 : index
    %c1_47 = arith.constant 1 : index
    %c0_48 = arith.constant 0 : index
    %c0_49 = arith.constant 0 : index
    %87 = vector.load %arg2[%c0_46, %c1_47, %c0_48, %c0_49] : memref<1x8x16x16xf32, #tpu.memory_space<vmem>>, vector<1x1x16x16xf32>
    %88 = vector.shape_cast %87 : vector<1x1x16x16xf32> to vector<16x16xf32>
    %89 = vector.broadcast %86 : f32 to vector<16x16xf32>
    %90 = arith.mulf %89, %88 : vector<16x16xf32>
    %91 = arith.addf %83, %90 : vector<16x16xf32>
    %c2_i32_50 = arith.constant 2 : i32
    %92 = arith.addi %77, %c2_i32_50 : i32
    %93 = arith.index_cast %92 : i32 to index
    %94 = memref.load %arg1[%93] : memref<48xf32, #tpu.memory_space<smem>>
    %c0_51 = arith.constant 0 : index
    %c2_52 = arith.constant 2 : index
    %c0_53 = arith.constant 0 : index
    %c0_54 = arith.constant 0 : index
    %95 = vector.load %arg2[%c0_51, %c2_52, %c0_53, %c0_54] : memref<1x8x16x16xf32, #tpu.memory_space<vmem>>, vector<1x1x16x16xf32>
    %96 = vector.shape_cast %95 : vector<1x1x16x16xf32> to vector<16x16xf32>
    %97 = vector.broadcast %94 : f32 to vector<16x16xf32>
    %98 = arith.mulf %97, %96 : vector<16x16xf32>
    %99 = arith.addf %91, %98 : vector<16x16xf32>
    %c3_i32_55 = arith.constant 3 : i32
    %100 = arith.addi %77, %c3_i32_55 : i32
    %101 = arith.index_cast %100 : i32 to index
    %102 = memref.load %arg1[%101] : memref<48xf32, #tpu.memory_space<smem>>
    %c0_56 = arith.constant 0 : index
    %c3_57 = arith.constant 3 : index
    %c0_58 = arith.constant 0 : index
    %c0_59 = arith.constant 0 : index
    %103 = vector.load %arg2[%c0_56, %c3_57, %c0_58, %c0_59] : memref<1x8x16x16xf32, #tpu.memory_space<vmem>>, vector<1x1x16x16xf32>
    %104 = vector.shape_cast %103 : vector<1x1x16x16xf32> to vector<16x16xf32>
    %105 = vector.broadcast %102 : f32 to vector<16x16xf32>
    %106 = arith.mulf %105, %104 : vector<16x16xf32>
    %107 = arith.addf %99, %106 : vector<16x16xf32>
    %c4_i32_60 = arith.constant 4 : i32
    %108 = arith.addi %77, %c4_i32_60 : i32
    %109 = arith.index_cast %108 : i32 to index
    %110 = memref.load %arg1[%109] : memref<48xf32, #tpu.memory_space<smem>>
    %c0_61 = arith.constant 0 : index
    %c4_62 = arith.constant 4 : index
    %c0_63 = arith.constant 0 : index
    %c0_64 = arith.constant 0 : index
    %111 = vector.load %arg2[%c0_61, %c4_62, %c0_63, %c0_64] : memref<1x8x16x16xf32, #tpu.memory_space<vmem>>, vector<1x1x16x16xf32>
    %112 = vector.shape_cast %111 : vector<1x1x16x16xf32> to vector<16x16xf32>
    %113 = vector.broadcast %110 : f32 to vector<16x16xf32>
    %114 = arith.mulf %113, %112 : vector<16x16xf32>
    %115 = arith.addf %107, %114 : vector<16x16xf32>
    %c5_i32_65 = arith.constant 5 : i32
    %116 = arith.addi %77, %c5_i32_65 : i32
    %117 = arith.index_cast %116 : i32 to index
    %118 = memref.load %arg1[%117] : memref<48xf32, #tpu.memory_space<smem>>
    %c0_66 = arith.constant 0 : index
    %c5_67 = arith.constant 5 : index
    %c0_68 = arith.constant 0 : index
    %c0_69 = arith.constant 0 : index
    %119 = vector.load %arg2[%c0_66, %c5_67, %c0_68, %c0_69] : memref<1x8x16x16xf32, #tpu.memory_space<vmem>>, vector<1x1x16x16xf32>
    %120 = vector.shape_cast %119 : vector<1x1x16x16xf32> to vector<16x16xf32>
    %121 = vector.broadcast %118 : f32 to vector<16x16xf32>
    %122 = arith.mulf %121, %120 : vector<16x16xf32>
    %123 = arith.addf %115, %122 : vector<16x16xf32>
    %c6_i32_70 = arith.constant 6 : i32
    %124 = arith.addi %77, %c6_i32_70 : i32
    %125 = arith.index_cast %124 : i32 to index
    %126 = memref.load %arg1[%125] : memref<48xf32, #tpu.memory_space<smem>>
    %c0_71 = arith.constant 0 : index
    %c6_72 = arith.constant 6 : index
    %c0_73 = arith.constant 0 : index
    %c0_74 = arith.constant 0 : index
    %127 = vector.load %arg2[%c0_71, %c6_72, %c0_73, %c0_74] : memref<1x8x16x16xf32, #tpu.memory_space<vmem>>, vector<1x1x16x16xf32>
    %128 = vector.shape_cast %127 : vector<1x1x16x16xf32> to vector<16x16xf32>
    %129 = vector.broadcast %126 : f32 to vector<16x16xf32>
    %130 = arith.mulf %129, %128 : vector<16x16xf32>
    %131 = arith.addf %123, %130 : vector<16x16xf32>
    %c7_i32_75 = arith.constant 7 : i32
    %132 = arith.addi %77, %c7_i32_75 : i32
    %133 = arith.index_cast %132 : i32 to index
    %134 = memref.load %arg1[%133] : memref<48xf32, #tpu.memory_space<smem>>
    %c0_76 = arith.constant 0 : index
    %c7_77 = arith.constant 7 : index
    %c0_78 = arith.constant 0 : index
    %c0_79 = arith.constant 0 : index
    %135 = vector.load %arg2[%c0_76, %c7_77, %c0_78, %c0_79] : memref<1x8x16x16xf32, #tpu.memory_space<vmem>>, vector<1x1x16x16xf32>
    %136 = vector.shape_cast %135 : vector<1x1x16x16xf32> to vector<16x16xf32>
    %137 = vector.broadcast %134 : f32 to vector<16x16xf32>
    %138 = arith.mulf %137, %136 : vector<16x16xf32>
    %139 = arith.addf %131, %138 : vector<16x16xf32>
    %c0_80 = arith.constant 0 : index
    %c1_81 = arith.constant 1 : index
    %c0_82 = arith.constant 0 : index
    %c0_83 = arith.constant 0 : index
    %140 = vector.load %arg3[%c0_80, %c1_81, %c0_82, %c0_83] : memref<1x3x16x16xf32, #tpu.memory_space<vmem>>, vector<1x1x16x16xf32>
    %141 = vector.shape_cast %140 : vector<1x1x16x16xf32> to vector<16x16xf32>
    %142 = arith.addf %139, %141 : vector<16x16xf32>
    %cst_84 = arith.constant dense<0.000000e+00> : vector<16x32xf32>
    %143 = tpu.matmul %142, %0, %cst_84 {dimension_numbers = #tpu.dot_dimension_numbers<[1], [0], [0], [1], [0, 0, 1, 1], [], []>} : vector<16x16xf32>, vector<16x32xf32>, vector<16x32xf32> -> vector<16x32xf32>
    %cst_85 = arith.constant dense<0.000000e+00> : vector<32x32xf32>
    %144 = tpu.matmul %1, %143, %cst_85 {dimension_numbers = #tpu.dot_dimension_numbers<[1], [0], [0], [1], [0, 0, 1, 1], [], []>} : vector<32x16xf32>, vector<16x32xf32>, vector<32x32xf32> -> vector<32x32xf32>
    %c0_86 = arith.constant 0 : index
    %c1_87 = arith.constant 1 : index
    %c0_88 = arith.constant 0 : index
    %c0_89 = arith.constant 0 : index
    %145 = vector.load %arg6[%c0_86, %c1_87, %c0_88, %c0_89] : memref<1x3x32x32xf32, #tpu.memory_space<vmem>>, vector<1x1x32x32xf32>
    %146 = vector.shape_cast %145 : vector<1x1x32x32xf32> to vector<32x32xf32>
    %147 = vector.shape_cast %144 : vector<32x32xf32> to vector<1x1x32x32xf32>
    tpu.vector_store %arg6[%c0_86, %c1_87, %c0_88, %c0_89], %147 {strides = array<i32>} : memref<1x3x32x32xf32, #tpu.memory_space<vmem>>, vector<1x1x32x32xf32>,
    %c3_i32_90 = arith.constant 3 : i32
    %148 = arith.muli %arg0, %c3_i32_90 : i32
    %c2_i32_91 = arith.constant 2 : i32
    %149 = arith.addi %148, %c2_i32_91 : i32
    %c8_i32_92 = arith.constant 8 : i32
    %150 = arith.muli %149, %c8_i32_92 : i32
    %151 = arith.index_cast %150 : i32 to index
    %152 = memref.load %arg1[%151] : memref<48xf32, #tpu.memory_space<smem>>
    %c0_93 = arith.constant 0 : index
    %c0_94 = arith.constant 0 : index
    %c0_95 = arith.constant 0 : index
    %c0_96 = arith.constant 0 : index
    %153 = vector.load %arg2[%c0_93, %c0_94, %c0_95, %c0_96] : memref<1x8x16x16xf32, #tpu.memory_space<vmem>>, vector<1x1x16x16xf32>
    %154 = vector.shape_cast %153 : vector<1x1x16x16xf32> to vector<16x16xf32>
    %155 = vector.broadcast %152 : f32 to vector<16x16xf32>
    %156 = arith.mulf %155, %154 : vector<16x16xf32>
    %c1_i32_97 = arith.constant 1 : i32
    %157 = arith.addi %150, %c1_i32_97 : i32
    %158 = arith.index_cast %157 : i32 to index
    %159 = memref.load %arg1[%158] : memref<48xf32, #tpu.memory_space<smem>>
    %c0_98 = arith.constant 0 : index
    %c1_99 = arith.constant 1 : index
    %c0_100 = arith.constant 0 : index
    %c0_101 = arith.constant 0 : index
    %160 = vector.load %arg2[%c0_98, %c1_99, %c0_100, %c0_101] : memref<1x8x16x16xf32, #tpu.memory_space<vmem>>, vector<1x1x16x16xf32>
    %161 = vector.shape_cast %160 : vector<1x1x16x16xf32> to vector<16x16xf32>
    %162 = vector.broadcast %159 : f32 to vector<16x16xf32>
    %163 = arith.mulf %162, %161 : vector<16x16xf32>
    %164 = arith.addf %156, %163 : vector<16x16xf32>
    %c2_i32_102 = arith.constant 2 : i32
    %165 = arith.addi %150, %c2_i32_102 : i32
    %166 = arith.index_cast %165 : i32 to index
    %167 = memref.load %arg1[%166] : memref<48xf32, #tpu.memory_space<smem>>
    %c0_103 = arith.constant 0 : index
    %c2_104 = arith.constant 2 : index
    %c0_105 = arith.constant 0 : index
    %c0_106 = arith.constant 0 : index
    %168 = vector.load %arg2[%c0_103, %c2_104, %c0_105, %c0_106] : memref<1x8x16x16xf32, #tpu.memory_space<vmem>>, vector<1x1x16x16xf32>
    %169 = vector.shape_cast %168 : vector<1x1x16x16xf32> to vector<16x16xf32>
    %170 = vector.broadcast %167 : f32 to vector<16x16xf32>
    %171 = arith.mulf %170, %169 : vector<16x16xf32>
    %172 = arith.addf %164, %171 : vector<16x16xf32>
    %c3_i32_107 = arith.constant 3 : i32
    %173 = arith.addi %150, %c3_i32_107 : i32
    %174 = arith.index_cast %173 : i32 to index
    %175 = memref.load %arg1[%174] : memref<48xf32, #tpu.memory_space<smem>>
    %c0_108 = arith.constant 0 : index
    %c3_109 = arith.constant 3 : index
    %c0_110 = arith.constant 0 : index
    %c0_111 = arith.constant 0 : index
    %176 = vector.load %arg2[%c0_108, %c3_109, %c0_110, %c0_111] : memref<1x8x16x16xf32, #tpu.memory_space<vmem>>, vector<1x1x16x16xf32>
    %177 = vector.shape_cast %176 : vector<1x1x16x16xf32> to vector<16x16xf32>
    %178 = vector.broadcast %175 : f32 to vector<16x16xf32>
    %179 = arith.mulf %178, %177 : vector<16x16xf32>
    %180 = arith.addf %172, %179 : vector<16x16xf32>
    %c4_i32_112 = arith.constant 4 : i32
    %181 = arith.addi %150, %c4_i32_112 : i32
    %182 = arith.index_cast %181 : i32 to index
    %183 = memref.load %arg1[%182] : memref<48xf32, #tpu.memory_space<smem>>
    %c0_113 = arith.constant 0 : index
    %c4_114 = arith.constant 4 : index
    %c0_115 = arith.constant 0 : index
    %c0_116 = arith.constant 0 : index
    %184 = vector.load %arg2[%c0_113, %c4_114, %c0_115, %c0_116] : memref<1x8x16x16xf32, #tpu.memory_space<vmem>>, vector<1x1x16x16xf32>
    %185 = vector.shape_cast %184 : vector<1x1x16x16xf32> to vector<16x16xf32>
    %186 = vector.broadcast %183 : f32 to vector<16x16xf32>
    %187 = arith.mulf %186, %185 : vector<16x16xf32>
    %188 = arith.addf %180, %187 : vector<16x16xf32>
    %c5_i32_117 = arith.constant 5 : i32
    %189 = arith.addi %150, %c5_i32_117 : i32
    %190 = arith.index_cast %189 : i32 to index
    %191 = memref.load %arg1[%190] : memref<48xf32, #tpu.memory_space<smem>>
    %c0_118 = arith.constant 0 : index
    %c5_119 = arith.constant 5 : index
    %c0_120 = arith.constant 0 : index
    %c0_121 = arith.constant 0 : index
    %192 = vector.load %arg2[%c0_118, %c5_119, %c0_120, %c0_121] : memref<1x8x16x16xf32, #tpu.memory_space<vmem>>, vector<1x1x16x16xf32>
    %193 = vector.shape_cast %192 : vector<1x1x16x16xf32> to vector<16x16xf32>
    %194 = vector.broadcast %191 : f32 to vector<16x16xf32>
    %195 = arith.mulf %194, %193 : vector<16x16xf32>
    %196 = arith.addf %188, %195 : vector<16x16xf32>
    %c6_i32_122 = arith.constant 6 : i32
    %197 = arith.addi %150, %c6_i32_122 : i32
    %198 = arith.index_cast %197 : i32 to index
    %199 = memref.load %arg1[%198] : memref<48xf32, #tpu.memory_space<smem>>
    %c0_123 = arith.constant 0 : index
    %c6_124 = arith.constant 6 : index
    %c0_125 = arith.constant 0 : index
    %c0_126 = arith.constant 0 : index
    %200 = vector.load %arg2[%c0_123, %c6_124, %c0_125, %c0_126] : memref<1x8x16x16xf32, #tpu.memory_space<vmem>>, vector<1x1x16x16xf32>
    %201 = vector.shape_cast %200 : vector<1x1x16x16xf32> to vector<16x16xf32>
    %202 = vector.broadcast %199 : f32 to vector<16x16xf32>
    %203 = arith.mulf %202, %201 : vector<16x16xf32>
    %204 = arith.addf %196, %203 : vector<16x16xf32>
    %c7_i32_127 = arith.constant 7 : i32
    %205 = arith.addi %150, %c7_i32_127 : i32
    %206 = arith.index_cast %205 : i32 to index
    %207 = memref.load %arg1[%206] : memref<48xf32, #tpu.memory_space<smem>>
    %c0_128 = arith.constant 0 : index
    %c7_129 = arith.constant 7 : index
    %c0_130 = arith.constant 0 : index
    %c0_131 = arith.constant 0 : index
    %208 = vector.load %arg2[%c0_128, %c7_129, %c0_130, %c0_131] : memref<1x8x16x16xf32, #tpu.memory_space<vmem>>, vector<1x1x16x16xf32>
    %209 = vector.shape_cast %208 : vector<1x1x16x16xf32> to vector<16x16xf32>
    %210 = vector.broadcast %207 : f32 to vector<16x16xf32>
    %211 = arith.mulf %210, %209 : vector<16x16xf32>
    %212 = arith.addf %204, %211 : vector<16x16xf32>
    %c0_132 = arith.constant 0 : index
    %c2_133 = arith.constant 2 : index
    %c0_134 = arith.constant 0 : index
    %c0_135 = arith.constant 0 : index
    %213 = vector.load %arg3[%c0_132, %c2_133, %c0_134, %c0_135] : memref<1x3x16x16xf32, #tpu.memory_space<vmem>>, vector<1x1x16x16xf32>
    %214 = vector.shape_cast %213 : vector<1x1x16x16xf32> to vector<16x16xf32>
    %215 = arith.addf %212, %214 : vector<16x16xf32>
    %cst_136 = arith.constant dense<0.000000e+00> : vector<16x32xf32>
    %216 = tpu.matmul %215, %0, %cst_136 {dimension_numbers = #tpu.dot_dimension_numbers<[1], [0], [0], [1], [0, 0, 1, 1], [], []>} : vector<16x16xf32>, vector<16x32xf32>, vector<16x32xf32> -> vector<16x32xf32>
    %cst_137 = arith.constant dense<0.000000e+00> : vector<32x32xf32>
    %217 = tpu.matmul %1, %216, %cst_137 {dimension_numbers = #tpu.dot_dimension_numbers<[1], [0], [0], [1], [0, 0, 1, 1], [], []>} : vector<32x16xf32>, vector<16x32xf32>, vector<32x32xf32> -> vector<32x32xf32>
    %c0_138 = arith.constant 0 : index
    %c2_139 = arith.constant 2 : index
    %c0_140 = arith.constant 0 : index
    %c0_141 = arith.constant 0 : index
    %218 = vector.load %arg6[%c0_138, %c2_139, %c0_140, %c0_141] : memref<1x3x32x32xf32, #tpu.memory_space<vmem>>, vector<1x1x32x32xf32>
    %219 = vector.shape_cast %218 : vector<1x1x32x32xf32> to vector<32x32xf32>
    %220 = vector.shape_cast %217 : vector<32x32xf32> to vector<1x1x32x32xf32>
    tpu.vector_store %arg6[%c0_138, %c2_139, %c0_140, %c0_141], %220 {strides = array<i32>} : memref<1x3x32x32xf32, #tpu.memory_space<vmem>>, vector<1x1x32x32xf32>,
    return
  }
  func.func @transform_0(%arg0: i32, %arg1: memref<48xf32, #tpu.memory_space<smem>>) -> (i32, i32, i32, i32) {
    %c0_i32 = arith.constant 0 : i32
    %c0_i32_0 = arith.constant 0 : i32
    %c0_i32_1 = arith.constant 0 : i32
    %c0_i32_2 = arith.constant 0 : i32
    return %arg0, %c0_i32, %c0_i32_0, %c0_i32_1 : i32, i32, i32, i32
  }
  func.func @transform_1(%arg0: i32, %arg1: memref<48xf32, #tpu.memory_space<smem>>) -> (i32, i32, i32, i32) {
    %c0_i32 = arith.constant 0 : i32
    %c0_i32_0 = arith.constant 0 : i32
    %c0_i32_1 = arith.constant 0 : i32
    %c0_i32_2 = arith.constant 0 : i32
    return %arg0, %c0_i32, %c0_i32_0, %c0_i32_1 : i32, i32, i32, i32
  }
  func.func @transform_2(%arg0: i32, %arg1: memref<48xf32, #tpu.memory_space<smem>>) -> (i32, i32) {
    %c0_i32 = arith.constant 0 : i32
    %c0_i32_0 = arith.constant 0 : i32
    %c0_i32_1 = arith.constant 0 : i32
    return %c0_i32, %c0_i32_0 : i32, i32
  }
  func.func @transform_3(%arg0: i32, %arg1: memref<48xf32, #tpu.memory_space<smem>>) -> (i32, i32) {
    %c0_i32 = arith.constant 0 : i32
    %c0_i32_0 = arith.constant 0 : i32
    %c0_i32_1 = arith.constant 0 : i32
    return %c0_i32, %c0_i32_0 : i32, i32
  }
  func.func @transform_4(%arg0: i32, %arg1: memref<48xf32, #tpu.memory_space<smem>>) -> (i32, i32, i32, i32) {
    %c0_i32 = arith.constant 0 : i32
    %c0_i32_0 = arith.constant 0 : i32
    %c0_i32_1 = arith.constant 0 : i32
    %c0_i32_2 = arith.constant 0 : i32
    return %arg0, %c0_i32, %c0_i32_0, %c0_i32_1 : i32, i32, i32, i32
  }
}

</mosaic_0001>

<bundles_post_ra>
// kernel: rgb_block_forward.1
= control target key start
LH: loop header
LB: loop body
LE: loop exit
PB: predicated region body
PF: predicated region fallthrough
CT: control target
= control target key end

     0   :  { %s2037_s0 = inlined_call_operand.vmem [shape: f32[48], index: 0, kind: input, shape index: {}]   ;;  %s2038_s1 = inlined_call_operand.hbm [shape: f32[2,8,16,16], index: 1, kind: input, shape index: {}]   ;;  %s2039_s2 = inlined_call_operand.hbm [shape: f32[2,3,16,16], index: 2, kind: input, shape index: {}]   ;;  %s2040_s3 = inlined_call_operand.vmem [shape: f32[16,32], index: 3, kind: input, shape index: {}]   ;;  %s2041_s4 = inlined_call_operand.vmem [shape: f32[32,16], index: 4, kind: input, shape index: {}]   ;;  %s2042_s5 = inlined_call_operand.hbm [shape: f32[2,3,32,32], index: 5, kind: output, shape index: {}]  }
   0x1   :  { %s10_s20 = sshll.u32 %s2037_s0, 4  ;;  %s11_s20 = int_to_ptr.vmem [resolvable:$true] %s10_s20 }
   0x2   :  { %s1398_s21 = scalar_lea.vmem %s11_s20, 16  ;;  %p1403_p1 = scmp.lt.s32.totalorder %s11_s20, %s11_s20 }
   0x3   :  { %p1399_p0 = scmp.ne.s32.totalorder %s11_s20, %s1398_s21  ;;  %p1404_p2 = scmp.lt.s32.totalorder %s1398_s21, %s1398_s21 }
   0x5   :  { %p1405_p3 = por %p1404_p2, %p1403_p1 }
   0x7   :  { %p1406_p4 = pnand %p1405_p3, %p1399_p0 }
   0x9   :  { %1409 = shalt.err (!%p1406_p4)  }
   0xa   :  { %s1544_s22 = smov [#allocation3]  }
   0xb   :  { %13 = dma.vmem_to_smem %s11_s20, 16, %s1544_s22, [#allocation2] }
   0xc   :  { %1514 = dma.done.wait [#allocation2], 16 }
   0xd   :  { %1515 = vsyncadd [#allocation2], 4294967280 }
   0xe   :  { %15 = sfence }
   0xf   :  { %16 = vsyncpa [#allocation5], 0 }
  0x10   :  { %18 = vsyncpa [#allocation5 + $0x1], 0 }
  0x11   :  { %19 = vsyncpa [#allocation8], 0 }
  0x12   :  { %21 = vsyncpa [#allocation8 + $0x1], 0 }
  0x13   :  { %22 = vsyncpa [#allocation6], 0 }
  0x14   :  { %24 = vsyncpa [#allocation6 + $0x1], 0  ;;  %s1585_s0 = smov 0   ;;  %s1587_s23 = smov 0  }
  0x15   :  { %s1589_s24 = smov 0   ;;  %s1591_s25 = smov 0  }
  0x16 LB: > { %s1606_s26 = sadd.s32 4294967295, %s1542_s25   ;;  %s1139_s27 = sadd.s32 4294967294, %s1542_s25   ;;  %s1542_s25 = sphi %s1591_s25, %s2058_s25   ;;  %s1538_s24 = sphi %s1589_s24, %s2057_s24   ;;  %s1534_s23 = sphi %s1587_s23, %s2056_s23   ;;  %s1530_s0 = sphi %s1585_s0, %s2055_s0  }
  0x17   : > { %s1610_s28 = sadd.s32 1, %s1542_s25   ;;  %s37_s29 = sadd.s32 1, %s1538_s24 }
  0x18   : > { %s34_s30 = ssub.s32 %s1542_s25, %s1610_s28  ;;  %p44_p5 = scmp.ne.s32.totalorder %s1538_s24, %s1534_s23 }
  0x19   : > { %p35_p6 = scmp.eq.s32.totalorder %s34_s30, 0  ;;  %p45_p7 = scmp.eq.s32.totalorder %s1542_s25, 0 }
  0x1a   : > { %p50_p8 = scmp.ne.s32.totalorder %s1534_s23, %s1530_s0  ;;  %p51_p9 = scmp.eq.s32.totalorder %s1606_s26, 0 }
  0x1b   : > { %s1622_s6 = scalar_select %p35_p6, %s1538_s24, %s37_s29  }
  0x1c   : > { %p1624_p10 = por %p45_p7, %p44_p5  ;;  %p1628_p11 = por %p51_p9, %p50_p8 }
  0x1d   : > { %p142_p12 = scmp.eq.s32.totalorder %s1606_s26, 1  ;;  %p148_p13 = scmp.eq.s32.totalorder %s1139_s27, 1 }
  0x1e   : > { %s2046_s8 = scalar_select %p1628_p11, 1, 0 }
  0x1f   : > { %p1359_p1 = scmp.lt.s32.totalorder %s1542_s25, 2  ;;  %p1635_p2 = por %p142_p12, %p44_p5 }
  0x20   : > { %p1639_p3 = por %p148_p13, %p50_p8  ;;  %s1644_s11 = sand.u32 1, %s1538_s24  }
  0x21   : > { %s2047_s9 = scalar_select %p1635_p2, 1, 0 }
  0x22   : > { %s2048_s10 = scalar_select %p1639_p3, 1, 0 }
  0x23   : > { %s1225_s12 = sshll.u32 %s1542_s25, 11  ;;  %s1142_s13 = sshll.u32 %s1644_s11, 7 }
  0x24   : > { %s1651_s16 = scalar_lea.hbm %s2038_s1, %s1225_s12  ;;  %s178_s17 = scalar_lea.vmem [#allocation4], %s1142_s13 }
  0x25   : > { %s185_s18 = sshll.u32 %s178_s17, 4  ;;  %p1655_p4 = pnand %p1359_p1, %p1624_p10  ;;  %s1659_s18 = int_to_ptr.vmem [resolvable:$true] %s185_s18 }
  0x26   : > { %s175_s20 = scalar_lea.sflag [#allocation5], %s1644_s11  ;;  %s1410_s21 = scalar_lea.hbm %s1651_s16, 2048 }
  0x27   : > { %p1411_p5 = scmp.ne.s32.totalorder %s1651_s16, %s1410_s21  ;;  %p1412_p6 = pneg %p1655_p4 }
  0x28   : > { %s1415_s29 = scalar_lea.hbm %s2038_s1, 4096  ;;  %p1416_p9 = scmp.lt.u32.totalorder %s1651_s16, %s2038_s1 }
  0x29   : > { %p1413_p7 = pnand %p1412_p6, %p1411_p5  ;;  %p1417_p10 = scmp.lt.u32.totalorder %s1415_s29, %s1410_s21 }
  0x2a   : > { %p1419_p13 = scmp.lt.u32.totalorder %s1410_s21, %s1651_s16 }
  0x2b   : > { %p1414_p8 = pneg %p1413_p7  ;;  %p1418_p12 = por %p1417_p10, %p1416_p9 }
  0x2d   : > { %p1420_p1 = por %p1419_p13, %p1418_p12 }
  0x2f   : > { %p1421_p0 = pnand %p1420_p1, %p1414_p8 }
  0x31   : > { %1424 = shalt.err (!%p1421_p0)
}
  0x32   : > { %s1425_s12 = scalar_lea.vmem %s1659_s18, 2048  ;;  %s1545_s13 = smov [#allocation4]  }
  0x33   : > { %p1426_p5 = scmp.ne.s32.totalorder %s1659_s18, %s1425_s12  ;;  %s1430_s14 = sshll.u32 %s1545_s13, 4  ;;  %s1431_s14 = int_to_ptr.vmem [resolvable:$false] %s1430_s14 }
  0x34   : > { %s1432_s15 = scalar_lea.vmem %s1431_s14, 4096  ;;  %p1433_p2 = scmp.lt.s32.totalorder %s1659_s18, %s1431_s14 }
  0x35   : > { %p1428_p7 = pnand %p1426_p5, %p1412_p6  ;;  %p1434_p9 = scmp.lt.s32.totalorder %s1432_s15, %s1425_s12 }
  0x37   : > { %p1429_p3 = pneg %p1428_p7  ;;  %p1435_p10 = por %p1434_p9, %p1433_p2 }
  0x39   : > { %p1436_p12 = pnand %p1435_p10, %p1429_p3 }
  0x3b   : > { %1439 = shalt.err (!%p1436_p12)
}
  0x3c   : > { %s1546_s17 = smov 128   ;;  %s1547_s21 = smov 8  }
  0x3d   : > { %1351 = dma.hbm_to_vmem [thread:$0]  (!%p1655_p4), %s1651_s16, 2048, %s1659_s18, %s175_s20, %s1546_s17, %s1546_s17, %s1547_s21  }
  0x3e   : > { %p1146_p0 = scmp.ge.s32.totalorder %s1542_s25, 1  ;;  %p214_p2 = scmp.lt.s32.totalorder %s1542_s25, 3 }
  0x3f   : > { %s1337_s22 = smul.u32 48, %s1644_s11  ;;  %s196_s16 = scalar_lea.sflag [#allocation8], %s1644_s11 }
  0x40   : > { %p1695_p3 = pnand %p1146_p0, %p214_p2  ;;  %s1338_s29 = smul.u32 768, %s1542_s25 }
  0x41   : > { %s199_s13 = scalar_lea.vmem [#allocation7], %s1337_s22 }
  0x42   : > { %s1703_s12 = scalar_lea.hbm %s2039_s2, %s1338_s29  ;;  %s206_s14 = sshll.u32 %s199_s13, 4  ;;  %s1705_s14 = int_to_ptr.vmem [resolvable:$true] %s206_s14 }
  0x43   : > { %s1440_s18 = scalar_lea.hbm %s1703_s12, 768  ;;  %s1445_s29 = scalar_lea.hbm %s2039_s2, 1536 }
  0x44   : > { %p1441_p8 = scmp.ne.s32.totalorder %s1703_s12, %s1440_s18  ;;  %p1446_p5 = scmp.lt.u32.totalorder %s1703_s12, %s2039_s2 }
  0x45   : > { %p1447_p7 = scmp.lt.u32.totalorder %s1445_s29, %s1440_s18  ;;  %p1449_p10 = scmp.lt.u32.totalorder %s1440_s18, %s1703_s12 }
  0x46   : > { %p1443_p13 = pnand %p1441_p8, %p1412_p6 }
  0x47   : > { %p1448_p9 = por %p1447_p7, %p1446_p5 }
  0x48   : > { %p1444_p1 = pneg %p1443_p13 }
  0x49   : > { %p1450_p12 = por %p1449_p10, %p1448_p9 }
  0x4b   : > { %p1451_p0 = pnand %p1450_p12, %p1444_p1 }
  0x4d   : > { %1454 = shalt.err (!%p1451_p0)
}
  0x4e   : > { %s1455_s22 = scalar_lea.vmem %s1705_s14, 768  ;;  %s1548_s13 = smov [#allocation7]  }
  0x4f   : > { %p1456_p2 = scmp.ne.s32.totalorder %s1705_s14, %s1455_s22  ;;  %s1460_s20 = sshll.u32 %s1548_s13, 4  ;;  %s1461_s20 = int_to_ptr.vmem [resolvable:$false] %s1460_s20 }
  0x50   : > { %s1462_s15 = scalar_lea.vmem %s1461_s20, 1536  ;;  %p1463_p11 = scmp.lt.s32.totalorder %s1705_s14, %s1461_s20 }
  0x51   : > { %p1458_p8 = pnand %p1456_p2, %p1412_p6  ;;  %p1464_p5 = scmp.lt.s32.totalorder %s1462_s15, %s1455_s22 }
  0x53   : > { %p1459_p13 = pneg %p1458_p8  ;;  %p1465_p7 = por %p1464_p5, %p1463_p11 }
  0x55   : > { %p1466_p9 = pnand %p1465_p7, %p1459_p13 }
  0x57   : > { %1469 = shalt.err (!%p1466_p9)
}
  0x58   : > { %1354 = dma.hbm_to_vmem [thread:$0]  (!%p1655_p4), %s1703_s12, 768, %s1705_s14, %s196_s16, %s1546_s17, %s1546_s17, %s1547_s21  }
  0x59   : > { %218 = sbr.rel (%p1695_p3) target bundleno = 808 (0x328), region = 36  ;;  %s1739_s18 = sand.u32 (!%p1695_p3), 1, %s1534_s23  }
  0x5a   : > { %s1147_s29 = sshll.u32 (!%p1695_p3), %s1739_s18, 7  ;;  %s221_s30 = scalar_lea.sflag (!%p1695_p3), [#allocation5], %s1739_s18 }
  0x5b   : > { %s1743_s19 = scalar_lea.vmem (!%p1695_p3), [#allocation4], %s1147_s29  ;;  %p2051_p11 = scmp.ne.s32.totalorder (!%p1695_p3), %s2046_s8, 0 }
  0x60   : > { %1517 = dma.done.wait (%p2051_p11), %s221_s30, 2048  }
  0x61   : > { %1519 = vsyncadd (%p2051_p11), %s221_s30, 4294965248  ;;  %s1339_s11 = smul.u32 48, %s1739_s18  ;;  %s230_s17 = scalar_lea.sflag [#allocation8], %s1739_s18 }
  0x63   : > { %s1751_s21 = scalar_lea.vmem [#allocation7], %s1339_s11 }
  0x64   : > { %1521 = dma.done.wait (%p2051_p11), %s230_s17, 768  }
  0x65   : > { %1523 = vsyncadd (%p2051_p11), %s230_s17, 4294966528  ;;  %s1758_s27 = smul.u32 24, %s1606_s26  ;;  %v263_v0 = vld [vmem:[%s2040_s3] sm:$0xff]  ;;  %v264_v1 = vld [vmem:[%s2040_s3 + $0x8] sm:$0xff]  ;;  %vm350_vm0 = vcmask 130048   ;;  %vm529_vm1 = vcmask 261120  }
  0x66   : > { %v1779_v2 = vld [vmem:[%s1743_s19] sm:$0xff]  ;;  %v1784_v3 = vpack.c.bf16 %v264_v1, %v263_v0  ;;  %v1787_v4 = vld [vmem:[%s1743_s19 + $0x8] sm:$0xff]  ;;  %v1790_v6 = vld [vmem:[%s1743_s19 + $0x10] sm:$0xff]  ;;  %p2052_p6 = scmp.ne.s32.totalorder %s2047_s9, 0 }
  0x67   : > { %s270_s12 = sld [smem:[#allocation3 + %s1758_s27]]  ;;  %s276_s14 = sadd.s32 1, %s1758_s27  ;;  %v1793_v7 = vld [vmem:[%s1743_s19 + $0x18] sm:$0xff]  ;;  %v1801_v11 = vld [vmem:[%s1743_s19 + $0x20] sm:$0xff]  ;;  %v1804_v12 = vld [vmem:[%s1743_s19 + $0x28] sm:$0xff] }
  0x68   : > { %s277_s16 = sld [smem:[#allocation3 + %s276_s14]]  ;;  %s286_s7 = sadd.s32 2, %s1758_s27  ;;  %v1807_v13 = vld [vmem:[%s1743_s19 + $0x30] sm:$0xff]  ;;  %1314 = vmatprep.subr.bf16.mxu0 %v1784_v3  ;;  %v1816_v17 = vld [vmem:[%s1743_s19 + $0x38] sm:$0xff]  ;;  %v1823_v21 = vld [vmem:[%s1743_s19 + $0x40] sm:$0xff] }
  0x69   : > { %s1763_s8 = sld [smem:[#allocation3 + %s286_s7]]  ;;  %s296_s22 = sadd.s32 3, %s1758_s27  ;;  %1316 = vmatpush3.bf16.msra.mxu0 %v1784_v3  ;;  %v1827_v24 = vld [vmem:[%s1743_s19 + $0x48] sm:$0xff]  ;;  %v1833_v27 = vld [vmem:[%s1743_s19 + $0x50] sm:$0xff]  ;;  %v1838_v32 = vld [vmem:[%s1743_s19 + $0x58] sm:$0xff] }
  0x6a   : > { %s1766_s13 = sld [smem:[#allocation3 + %s296_s22]]  ;;  %s306_s20 = sadd.s32 4, %s1758_s27  ;;  %1322 = vmatprep.subr.bf16.mxu0 %v1784_v3  ;;  %v1842_v34 = vld [vmem:[%s1743_s19 + $0x60] sm:$0xff]  ;;  %v1847_v39 = vld [vmem:[%s1743_s19 + $0x68] sm:$0xff]  ;;  %v1851_v41 = vld [vmem:[%s1743_s19 + $0x70] sm:$0xff] }
  0x6b   : > { %s1769_s15 = sld [smem:[#allocation3 + %s306_s20]]  ;;  %s316_s29 = sadd.s32 5, %s1758_s27  ;;  %v1856_v46 = vld [vmem:[%s1743_s19 + $0x78] sm:$0xff]  ;;  %v346_v54 = vld [vmem:[%s1751_s21] sm:$0xff] }
  0x6c   : > { %s1781_s7 = sld [smem:[#allocation3 + %s316_s29]]  ;;  %s326_s22 = sadd.s32 6, %s1758_s27  ;;  %v347_v57 = vld [vmem:[%s1751_s21 + $0x8] sm:$0xff] }
  0x6d   : > { %v273_v5 = vstv %s270_s12  ;;  %s1795_s20 = sld [smem:[#allocation3 + %s326_s22]]  ;;  %s336_s30 = sadd.s32 7, %s1758_s27 }
  0x6e   : > { %v274_v8 = vmul.f32 %v273_v5, %v1779_v2  ;;  %v275_v9 = vmul.f32 %v273_v5, %v1787_v4  ;;  %v281_v10 = vstv %s277_s16  ;;  %s1809_s12 = sld [smem:[#allocation3 + %s336_s30]]  ;;  %s1867_s19 = sadd.s32 8, %s1758_s27 }
  0x6f   : > { %v282_v14 = vmul.f32 %v1790_v6, %v281_v10  ;;  %v283_v15 = vmul.f32 %v1793_v7, %v281_v10  ;;  %v291_v16 = vstv %s1763_s8  ;;  %s543_s16 = sadd.s32 1, %s1867_s19  ;;  %s537_s8 = sld [smem:[#allocation3 + %s1867_s19]] }
  0x70   : > { %v292_v18 = vmul.f32 %v1801_v11, %v291_v16  ;;  %v293_v19 = vmul.f32 %v1804_v12, %v291_v16  ;;  %v301_v20 = vstv %s1766_s13  ;;  %s544_s13 = sld [smem:[#allocation3 + %s543_s16]]  ;;  %s561_s11 = sadd.s32 3, %s1867_s19 }
  0x71   : > { %v284_v22 = vadd.f32 %v282_v14, %v274_v8  ;;  %v302_v23 = vmul.f32 %v1807_v13, %v301_v20  ;;  %v311_v25 = vstv %s1769_s15  ;;  %v303_v26 = vmul.f32 %v1816_v17, %v301_v20  ;;  %s552_s15 = sadd.s32 2, %s1867_s19  ;;  %s562_s17 = sld [smem:[#allocation3 + %s561_s11]] }
  0x72   : > { %v321_v28 = vstv %s1781_s7  ;;  %v285_v29 = vadd.f32 %v283_v15, %v275_v9  ;;  %v312_v31 = vmul.f32 %v1823_v21, %v311_v25  ;;  %v313_v33 = vmul.f32 %v1827_v24, %v311_v25  ;;  %s553_s29 = sld [smem:[#allocation3 + %s552_s15]]  ;;  %s570_s14 = sadd.s32 4, %s1867_s19 }
  0x73   : > { %v294_v30 = vadd.f32 %v292_v18, %v284_v22  ;;  %v331_v35 = vstv %s1795_s20  ;;  %v322_v38 = vmul.f32 %v1833_v27, %v321_v28  ;;  %v323_v40 = vmul.f32 %v1838_v32, %v321_v28  ;;  %s571_s7 = sld [smem:[#allocation3 + %s570_s14]]  ;;  %s579_s22 = sadd.s32 5, %s1867_s19 }
  0x74   : > { %v295_v36 = vadd.f32 %v293_v19, %v285_v29  ;;  %v341_v42 = vstv %s1809_s12  ;;  %v332_v45 = vmul.f32 %v1842_v34, %v331_v35  ;;  %v333_v47 = vmul.f32 %v1847_v39, %v331_v35  ;;  %s580_s20 = sld [smem:[#allocation3 + %s579_s22]]  ;;  %s588_s30 = sadd.s32 6, %s1867_s19 }
  0x75   : > { %v304_v37 = vadd.f32 %v302_v23, %v294_v30  ;;  %v342_v50 = vmul.f32 %v1851_v41, %v341_v42  ;;  %v343_v51 = vmul.f32 %v1856_v46, %v341_v42  ;;  %v540_v61 = vstv %s537_s8  ;;  %s589_s12 = sld [smem:[#allocation3 + %s588_s30]]  ;;  %s597_s16 = sadd.s32 7, %s1867_s19 }
  0x76   : > { %v305_v43 = vadd.f32 %v303_v26, %v295_v36  ;;  %v547_v62 = vstv %s544_s13  ;;  %v541_v63 = vmul.f32 %v540_v61, %v1779_v2  ;;  %v542_v1 = vmul.f32 %v540_v61, %v1787_v4  ;;  %s598_s8 = sld [smem:[#allocation3 + %s597_s16]]  ;;  %s1907_s15 = sadd.s32 16, %s1758_s27 }
  0x77   : > { %v314_v44 = vadd.f32 %v312_v31, %v304_v37  ;;  %v548_v0 = vmul.f32 %v1790_v6, %v547_v62  ;;  %v549_v5 = vmul.f32 %v1793_v7, %v547_v62  ;;  %v565_v15 = vstv %s562_s17  ;;  %s784_s11 = sld [smem:[#allocation3 + %s1907_s15]]  ;;  %s799_s14 = sadd.s32 2, %s1907_s15 }
  0x78   : > { %v315_v48 = vadd.f32 %v313_v33, %v305_v43  ;;  %v556_v8 = vstv %s553_s29  ;;  %v566_v19 = vmul.f32 %v1807_v13, %v565_v15  ;;  %v567_v20 = vmul.f32 %v1816_v17, %v565_v15  ;;  %s790_s29 = sadd.s32 1, %s1907_s15  ;;  %s808_s22 = sadd.s32 3, %s1907_s15 }
  0x79   : > { %v324_v49 = vadd.f32 %v322_v38, %v314_v44  ;;  %v550_v9 = vadd.f32 %v548_v0, %v541_v63  ;;  %v557_v10 = vmul.f32 %v1801_v11, %v556_v8  ;;  %v558_v14 = vmul.f32 %v1804_v12, %v556_v8  ;;  %v1892_v38 = vld [vmem:[%s2041_s4] sm:$0xff]  ;;  %s791_s17 = sld [smem:[#allocation3 + %s790_s29]]  ;;  %s817_s30 = sadd.s32 4, %s1907_s15 }
  0x7a   : > { %v325_v52 = vadd.f32 %v323_v40, %v315_v48  ;;  %v551_v16 = vadd.f32 %v549_v5, %v542_v1  ;;  %v574_v22 = vstv %s571_s7  ;;  %v583_v29 = vstv %s580_s20  ;;  %1273 = vmatprep.mubr.msk.f32.mxu1 %vm350_vm0, %v1892_v38  ;;  %s800_s7 = sld [smem:[#allocation3 + %s799_s14]]  ;;  %s844_s13 = sadd.s32 7, %s1907_s15 }
  0x7b   : > { %v334_v53 = vadd.f32 %v332_v45, %v324_v49  ;;  %v559_v18 = vadd.f32 %v557_v10, %v550_v9  ;;  %v575_v26 = vmul.f32 %v1823_v21, %v574_v22  ;;  %v576_v28 = vmul.f32 %v1827_v24, %v574_v22  ;;  %s809_s20 = sld [smem:[#allocation3 + %s808_s22]] }
  0x7c   : > { %v335_v55 = vadd.f32 %v333_v47, %v325_v52  ;;  %v560_v23 = vadd.f32 %v558_v14, %v551_v16  ;;  %v584_v33 = vmul.f32 %v1833_v27, %v583_v29  ;;  %v585_v35 = vmul.f32 %v1838_v32, %v583_v29  ;;  %v1183_v52 = vld [vmem:[%s1751_s21 + $0x10] sm:$0xff]  ;;  %s818_s27 = sld [smem:[#allocation3 + %s817_s30]]  ;;  %s1341_s30 = smul.u32 1536, %s1606_s26 }
  0x7d   : > { %v344_v56 = vadd.f32 %v342_v50, %v334_v53  ;;  %v568_v25 = vadd.f32 %v566_v19, %v559_v18  ;;  %v592_v36 = vstv %s589_s12  ;;  %v601_v44 = vstv %s598_s8  ;;  %s826_s12 = sadd.s32 5, %s1907_s15  ;;  %s835_s8 = sadd.s32 6, %s1907_s15 }
  0x7e   : > { %v345_v58 = vadd.f32 %v343_v51, %v335_v55  ;;  %v569_v30 = vadd.f32 %v567_v20, %v560_v23  ;;  %v593_v42 = vmul.f32 %v1842_v34, %v592_v36  ;;  %v594_v43 = vmul.f32 %v1847_v39, %v592_v36  ;;  %v1184_v55 = vld [vmem:[%s1751_s21 + $0x18] sm:$0xff]  ;;  %s827_s16 = sld [smem:[#allocation3 + %s826_s12]]  ;;  %s1030_s26 = scalar_lea.sflag [#allocation6], %s1739_s18 }
  0x7f   : > { %v348_v59 = vadd.f32 %v346_v54, %v344_v56  ;;  %v577_v31 = vadd.f32 %v575_v26, %v568_v25  ;;  %v602_v48 = vmul.f32 %v1851_v41, %v601_v44  ;;  %v603_v49 = vmul.f32 %v1856_v46, %v601_v44  ;;  %s836_s19 = sld [smem:[#allocation3 + %s835_s8]]  ;;  %s1987_s8 = scalar_lea.hbm %s2042_s5, %s1341_s30 }
  0x80   : > { %v349_v60 = vadd.f32 %v347_v57, %v345_v58  ;;  %v578_v37 = vadd.f32 %v576_v28, %v569_v30  ;;  %v787_v57 = vstv %s784_s11  ;;  %v794_v58 = vstv %s791_s17  ;;  %s845_s29 = sld [smem:[#allocation3 + %s844_s13]]  ;;  %s1549_s13 = smov [#allocation9]  }
  0x81   : > { %1266 = vmatprep.mubr.msk.f32.mxu0 %vm350_vm0, %v348_v59  ;;  %v586_v40 = vadd.f32 %v584_v33, %v577_v31  ;;  %v788_v59 = vmul.f32 %v787_v57, %v1779_v2  ;;  %v803_v61 = vstv %s800_s7  ;;  %v789_v62 = vmul.f32 %v787_v57, %v1787_v4 }
  0x82   : > { %1267 = vmatmul.mubr.msk.f32.vlgmr.msra.gmra.mrb[0].mxu0 %vm350_vm0, %v349_v60  ;;  %v587_v45 = vadd.f32 %v585_v35, %v578_v37  ;;  %v795_v60 = vmul.f32 %v1790_v6, %v794_v58  ;;  %v796_v63 = vmul.f32 %v1793_v7, %v794_v58  ;;  %v804_v1 = vmul.f32 %v1801_v11, %v803_v61  ;;  %v1210_v35 = vld [vmem:[%s1751_s21 + $0x20] sm:$0xff]  ;;  %v1211_v37 = vld [vmem:[%s1751_s21 + $0x28] sm:$0xff]  ;;  %s1340_s21 = smul.u32 96, %s1739_s18 }
  0x83   : > { %1324 = vmatpush3.bf16.msra.mxu0 %v1784_v3  ;;  %v595_v47 = vadd.f32 %v593_v42, %v586_v40  ;;  %v812_v5 = vstv %s809_s20  ;;  %v805_v9 = vmul.f32 %v1804_v12, %v803_v61  ;;  %v821_v10 = vstv %s818_s27 }
  0x84   : > { %v596_v50 = vadd.f32 %v594_v43, %v587_v45  ;;  %v797_v0 = vadd.f32 %v795_v60, %v788_v59  ;;  %v798_v8 = vadd.f32 %v796_v63, %v789_v62  ;;  %v813_v6 = vmul.f32 %v1807_v13, %v812_v5  ;;  %s1957_s20 = scalar_lea.vmem [#allocation9], %s1340_s21 }
  0x85   : > { %v604_v51 = vadd.f32 %v602_v48, %v595_v47  ;;  %v814_v4 = vmul.f32 %v1816_v17, %v812_v5  ;;  %v822_v7 = vmul.f32 %v1823_v21, %v821_v10  ;;  %v830_v16 = vstv %s827_s16  ;;  %s1043_s27 = sshll.u32 %s1957_s20, 4  ;;  %s1989_s27 = int_to_ptr.vmem [resolvable:$true] %s1043_s27 }
  0x86   : > { %v605_v53 = vadd.f32 %v603_v49, %v596_v50  ;;  %v806_v2 = vadd.f32 %v804_v1, %v797_v0  ;;  %v807_v14 = vadd.f32 %v805_v9, %v798_v8  ;;  %v823_v18 = vmul.f32 %v1827_v24, %v821_v10 }
  0x87   : > { %v609_v54 = vadd.f32 %v1183_v52, %v604_v51  ;;  %v831_v12 = vmul.f32 %v1833_v27, %v830_v16  ;;  %v839_v20 = vstv %s836_s19  ;;  %v832_v13 = vmul.f32 %v1838_v32, %v830_v16  ;;  %v266_v32 = vld [vmem:[%s2041_s4 + $0x8] sm:$0xff]  ;;  %s1470_s19 = scalar_lea.vmem %s1989_s27, 1536 }
  0x88   : > { %v610_v56 = vadd.f32 %v1184_v55, %v605_v53  ;;  %v815_v15 = vadd.f32 %v813_v6, %v806_v2  ;;  %v816_v11 = vadd.f32 %v814_v4, %v807_v14  ;;  %v840_v25 = vmul.f32 %v1842_v34, %v839_v20  ;;  %p1471_p4 = scmp.ne.s32.totalorder %s1989_s27, %s1470_s19 }
  0x89   : > { %1283 = vmatprep.mubr.msk.f32.mxu0 %vm350_vm0, %v609_v54  ;;  %v848_v26 = vstv %s845_s29  ;;  %v841_v21 = vmul.f32 %v1847_v39, %v839_v20  ;;  %v267_v39 = vld [vmem:[%s2041_s4 + $0x10] sm:$0xff]  ;;  %s1474_s29 = sshll.u32 %s1549_s13, 4  ;;  %s1475_s29 = int_to_ptr.vmem [resolvable:$false] %s1474_s29 }
  0x8a   : > { %1284 = vmatmul.mubr.msk.f32.vlgmr.msra.gmra.mrb[2].mxu0 %vm350_vm0, %v610_v56  ;;  %v824_v19 = vadd.f32 %v822_v7, %v815_v15  ;;  %v825_v22 = vadd.f32 %v823_v18, %v816_v11  ;;  %v849_v24 = vmul.f32 %v1851_v41, %v848_v26  ;;  %v850_v33 = vmul.f32 %v1856_v46, %v848_v26  ;;  %v268_v46 = vld [vmem:[%s2041_s4 + $0x18] sm:$0xff]  ;;  %p1472_p3 = pnand %p1471_p4, %p2052_p6  ;;  %s1476_s15 = scalar_lea.vmem %s1475_s29, 3072 }
  0x8b   : > { %1290 = vmatprep.mubr.msk.f32.mxu0 %vm350_vm0, %v1892_v38  ;;  %p1477_p10 = scmp.lt.s32.totalorder %s1989_s27, %s1475_s29  ;;  %p1478_p12 = scmp.lt.s32.totalorder %s1476_s15, %s1470_s19 }
  0x8c   : > { %v833_v23 = vadd.f32 %v831_v12, %v824_v19  ;;  %v834_v28 = vadd.f32 %v832_v13, %v825_v22  ;;  %p1473_p1 = pneg %p1472_p3 }
  0x8d   : > { %p1479_p0 = por %p1478_p12, %p1477_p10 }
  0x8e   : > { %v842_v30 = vadd.f32 %v840_v25, %v833_v23  ;;  %v843_v27 = vadd.f32 %v841_v21, %v834_v28 }
  0x8f   : > { %p1480_p2 = pnand %p1479_p0, %p1473_p1 }
  0x90   : > { %v851_v34 = vadd.f32 %v849_v24, %v842_v30  ;;  %v852_v41 = vadd.f32 %v850_v33, %v843_v27 }
  0x92   : > { %v856_v36 = vadd.f32 %v1210_v35, %v851_v34  ;;  %v857_v40 = vadd.f32 %v1211_v37, %v852_v41 }
 0x155   : > { %v1268_v17 = vpop.f32.mrb[0].mxu0 }
 0x156   : > { %v423_v29 = vpop.f32.mrb[1].mxu0 }
 0x157   : > { %v1317_v31 = vpack.c.bf16 %v1268_v17, %v423_v29 }
 0x159   : > { %1318 = vmatprep.subr.bf16.mxu1 %v1317_v31 }
 0x15a   : > { %1320 = vmatpush3.bf16.msra.mxu1 %v1317_v31 }
 0x15b   : > { %1330 = vmatprep.subr.bf16.mxu1 %v1784_v3 }
 0x15d   : > { %1274 = vmatmul.mubr.msk.f32.vlgmr.msra.gmra.mrb[0].mxu1 %vm350_vm0, %v266_v32 }
 0x15e   : > { %1332 = vmatpush3.bf16.msra.mxu1 %v1784_v3  ;;  %1276 = vmatprep.mubr.msk.f32.mxu1 %vm350_vm0, %v267_v39  ;;  %v1285_v3 = vpop.f32.mrb[2].mxu0 }
 0x15f   : > { %v683_v42 = vpop.f32.mrb[3].mxu0 }
 0x160   : > { %v1325_v43 = vpack.c.bf16 %v1285_v3, %v683_v42 }
 0x161   : > { %1277 = vmatmul.mubr.msk.f32.gmra.mrb[2].mxu1 %vm350_vm0, %v268_v46 }
 0x162   : > { %1300 = vmatprep.mubr.msk.f32.mxu1 %vm350_vm0, %v856_v36  ;;  %1326 = vmatprep.subr.bf16.mxu0 %v1325_v43 }
 0x163   : > { %1328 = vmatpush3.bf16.msra.mxu0 %v1325_v43 }
 0x165   : > { %1301 = vmatmul.mubr.msk.f32.vlgmr.msra.gmra.mrb[4].mxu1 %vm350_vm0, %v857_v40 }
 0x166   : > { %1307 = vmatprep.mubr.msk.f32.mxu1 %vm350_vm0, %v1892_v38  ;;  %1291 = vmatmul.mubr.msk.f32.vlgmr.msra.gmra.mrb[4].mxu0 %vm350_vm0, %v266_v32 }
 0x167   : > { %1293 = vmatprep.mubr.msk.f32.mxu0 %vm350_vm0, %v267_v39 }
 0x16a   : > { %1294 = vmatmul.mubr.msk.f32.gmra.mrb[6].mxu0 %vm350_vm0, %v268_v46 }
 0x230   : > { %v1275_v44 = vpop.f32.mrb[0].mxu1 }
 0x231   : > { %531 = vst.msk [vmem:[%s1957_s20 + $0x8] sm:$0xff] %vm529_vm1, %v1275_v44  ;;  %v510_v38 = vpop.f32.mrb[1].mxu1 }
 0x232   : > { %530 = vst.msk [vmem:[%s1957_s20] sm:$0xff] %vm529_vm1, %v510_v38 }
 0x234   : > { %v1278_v45 = vpop.f32.mrb[2].mxu1 }
 0x235   : > { %533 = vst.msk [vmem:[%s1957_s20 + $0x18] sm:$0xff] %vm529_vm1, %v1278_v45  ;;  %v520_v47 = vpop.f32.mrb[3].mxu1 }
 0x236   : > { %532 = vst.msk [vmem:[%s1957_s20 + $0x10] sm:$0xff] %vm529_vm1, %v520_v47 }
 0x238   : > { %v1302_v48 = vpop.f32.mrb[4].mxu1 }
 0x239   : > { %v930_v49 = vpop.f32.mrb[5].mxu1  ;;  %v1292_v51 = vpop.f32.mrb[4].mxu0 }
 0x23a   : > { %v1333_v50 = vpack.c.bf16 %v1302_v48, %v930_v49  ;;  %1192 = vst.msk [vmem:[%s1957_s20 + $0x28] sm:$0xff] %vm529_vm1, %v1292_v51  ;;  %v758_v52 = vpop.f32.mrb[5].mxu0 }
 0x23b   : > { %1191 = vst.msk [vmem:[%s1957_s20 + $0x20] sm:$0xff] %vm529_vm1, %v758_v52 }
 0x23c   : > { %1334 = vmatprep.subr.bf16.mxu1 %v1333_v50 }
 0x23d   : > { %1336 = vmatpush3.bf16.msra.mxu1 %v1333_v50  ;;  %v1295_v53 = vpop.f32.mrb[6].mxu0 }
 0x23e   : > { %1194 = vst.msk [vmem:[%s1957_s20 + $0x38] sm:$0xff] %vm529_vm1, %v1295_v53  ;;  %v768_v54 = vpop.f32.mrb[7].mxu0 }
 0x23f   : > { %1193 = vst.msk [vmem:[%s1957_s20 + $0x30] sm:$0xff] %vm529_vm1, %v768_v54 }
 0x240   : > { %1308 = vmatmul.mubr.msk.f32.vlgmr.msra.gmra.mrb[6].mxu1 %vm350_vm0, %v266_v32 }
 0x241   : > { %1310 = vmatprep.mubr.msk.f32.mxu1 %vm350_vm0, %v267_v39 }
 0x244   : > { %1311 = vmatmul.mubr.msk.f32.gmra.mrb[8].mxu1 %vm350_vm0, %v268_v46 }
 0x313   : > { %v1309_v55 = vpop.f32.mrb[6].mxu1 }
 0x314   : > { %1219 = vst.msk [vmem:[%s1957_s20 + $0x48] sm:$0xff] %vm529_vm1, %v1309_v55  ;;  %v1005_v56 = vpop.f32.mrb[7].mxu1 }
 0x315   : > { %1218 = vst.msk [vmem:[%s1957_s20 + $0x40] sm:$0xff] %vm529_vm1, %v1005_v56 }
 0x317   : > { %v1312_v57 = vpop.f32.mrb[8].mxu1 }
 0x318   : > { %1221 = vst.msk [vmem:[%s1957_s20 + $0x58] sm:$0xff] %vm529_vm1, %v1312_v57  ;;  %v1015_v58 = vpop.f32.mrb[9].mxu1 }
 0x319   : > { %1220 = vst.msk [vmem:[%s1957_s20 + $0x50] sm:$0xff] %vm529_vm1, %v1015_v58 }
 0x31a   : > { %1483 = shalt.err (!%p1480_p2)
}
 0x31b   : > { %s1484_s11 = scalar_lea.hbm %s1987_s8, 1536  ;;  %s1488_s7 = scalar_lea.hbm %s2042_s5, 3072 }
 0x31c   : > { %p1485_p8 = scmp.ne.s32.totalorder %s1987_s8, %s1484_s11  ;;  %p1489_p7 = scmp.lt.u32.totalorder %s1987_s8, %s2042_s5 }
 0x31d   : > { %p1490_p9 = scmp.lt.u32.totalorder %s1488_s7, %s1484_s11  ;;  %p1492_p4 = scmp.lt.u32.totalorder %s1484_s11, %s1987_s8 }
 0x31e   : > { %p1486_p13 = pnand %p1485_p8, %p2052_p6 }
 0x31f   : > { %p1491_p11 = por %p1490_p9, %p1489_p7 }
 0x320   : > { %p1487_p5 = pneg %p1486_p13 }
 0x321   : > { %p1493_p3 = por %p1492_p4, %p1491_p11 }
 0x323   : > { %p1494_p1 = pnand %p1493_p3, %p1487_p5 }
 0x325   : > { %1497 = shalt.err (!%p1494_p1)
}
 0x326   : > { %s1550_s20 = smov 128   ;;  %s1551_s30 = smov 8  }
 0x327   : > { %1346 = dma.vmem_to_hbm [thread:$0]  (%p2052_p6), %s1989_s27, 1536, %s1987_s8, %s1030_s26, %s1550_s20, %s1550_s20, %s1551_s30  }
 0x328 PF: > { %s1058_s12 = sand.u32 1, %s1530_s0   ;;  %p2053_p10 = scmp.ne.s32.totalorder %s2048_s10, 0 }
 0x329   : > { %p2054_p12 = scmp.ge.s32.totalorder %s1542_s25, 2  ;;  %s1059_s16 = scalar_lea.sflag [#allocation6], %s1058_s12 }
 0x32b   : > { %p1356_p0 = pnand %p2054_p12, %p2053_p10 }
 0x32d   : > { %1525 = dma.done.wait (!%p1356_p0), %s1059_s16, 1536  }
 0x32e   : > { %1527 = vsyncadd (!%p1356_p0), %s1059_s16, 4294965760  ;;  %p27_p2 = scmp.ge.s32.totalorder %s1610_s28, 4   ;;  %s2055_s0 = smov %s1534_s23 }
 0x32f   : > { %s2056_s23 = smov %s1538_s24  ;;  %s2057_s24 = smov %s1622_s6 }
 0x330   : > { %s2058_s25 = smov %s1610_s28  ;;  %29 = sbr.rel (!%p27_p2) target bundleno = 22 (0x16), region = 105 }
 0x337   :  { %1064 = vsyncpa [#allocation5], 1 }
 0x338   :  { %1066 = vsyncpa [#allocation5 + $0x1], 1 }
 0x339   :  { %1067 = vsyncpa [#allocation8], 1 }
 0x33a   :  { %1069 = vsyncpa [#allocation8 + $0x1], 1 }
 0x33b   :  { %1070 = vsyncpa [#allocation6], 1 }
 0x33c   :  { %1072 = vsyncpa [#allocation6 + $0x1], 1 }

</bundles_post_ra>
